<compile_context>
chip_gen: v5e
topology: v5e:2x2
jax: 0.10.0
libtpu: 0.0.40
codegen_flags: <defaults>
</compile_context>

<pallas_src>
import functools

import jax
import jax.numpy as jnp
from jax.experimental import pallas as pl
from jax.experimental.pallas import tpu as pltpu


def layernorm_kernel(x_ref, a_ref, b_ref, o_ref, *, epsilon):
    # x arrives in its native dtype (bf16 stays bf16 through the DMA); widen
    # in-vreg only, so HBM bytes moved are not doubled for bf16 inputs.
    x = x_ref[...].astype(jnp.float32)
    n = x.shape[-1]
    mean = jnp.mean(x, axis=-1, keepdims=True)
    diff = x - mean
    # PyTorch's x.std(-1) is the UNBIASED std (Bessel correction, N-1 divisor).
    var = jnp.sum(diff * diff, axis=-1, keepdims=True) * (1.0 / (n - 1))
    std = jnp.sqrt(var)
    # Per-row reciprocal goes to the EUP slot (approx vrcp) -> effectively free;
    # turns the per-element f32 divide into a VPU multiply.
    inv = pl.reciprocal(std + epsilon, approx=True)          # (tile, 1)
    a = a_ref[...].astype(jnp.float32)                       # no-op if already f32
    b = b_ref[...].astype(jnp.float32)
    y = diff * (a * inv) + b
    o_ref[...] = y.astype(o_ref.dtype)


def _round_up(x, m):
    return ((x + m - 1) // m) * m


def _choose_row_tile(rows, features, itemsize,
                     max_tile=1024, block_budget_bytes=24 * 1024 * 1024):
    """Largest row tile (multiple of 8) such that the 4 live blocks
    (double-buffered input + double-buffered output, each tile x features)
    fit a conservative budget that is safe per-TensorCore on v5e/v6e
    (128 MiB physical) and on v7x (64 MiB physical / ~32 MiB scoped)."""
    per_row_bytes = 4 * features * itemsize      # 2 in-buffers + 2 out-buffers
    tile = block_budget_bytes // max(per_row_bytes, 1)
    tile = max(8, min(max_tile, tile))
    tile = (tile // 8) * 8                       # keep a multiple of 8
    tile = min(tile, _round_up(rows, 8))         # never exceed the (8-aligned) rows
    return max(tile, 8)


def layer_norm(x, a2, b2, epsilon=1e-6, max_row_tile=1024):
    orig_shape = x.shape
    features = orig_shape[-1]
    rows = 1
    for d in orig_shape[:-1]:
        rows *= d
    x2 = x.reshape(rows, features)
    a2_2d = a2.reshape(1, features)
    b2_2d = b2.reshape(1, features)

    itemsize = jnp.dtype(x.dtype).itemsize
    tile = _choose_row_tile(rows, features, itemsize, max_row_tile)

    # Tail handling: pad rows up to a multiple of the tile instead of shrinking
    # the tile to a non-multiple-of-8 (which would violate the (8,128) rule or
    # degrade to tile=1).  Zero-padded rows compute junk (finite) and are
    # sliced off below.
    padded_rows = _round_up(rows, tile)
    if padded_rows != rows:
        x2 = jnp.pad(x2, ((0, padded_rows - rows), (0, 0)))

    grid = (padded_rows // tile,)

    # Explicit scoped-VMEM request: what the 4 live blocks actually need plus
    # headroom, clamped so it is valid on every generation (<= v7x's 64 MiB).
    block_bytes = tile * features * itemsize
    vmem_limit = int(4 * block_bytes * 1.25) + (2 << 20)
    vmem_limit = max(16 << 20, min(vmem_limit, 48 << 20))

    # NOTE: for peak store bandwidth `features` should be a multiple of 128
    # (lane-dense vst).  Smaller feature dims (like the test's 32) still run
    # correctly but waste lanes on masked partial stores.
    out = pl.pallas_call(
        functools.partial(layernorm_kernel, epsilon=epsilon),
        out_shape=jax.ShapeDtypeStruct((padded_rows, features), x.dtype),
        grid_spec=pltpu.PrefetchScalarGridSpec(
            num_scalar_prefetch=0,
            grid=grid,
            in_specs=[
                pl.BlockSpec((tile, features), lambda i: (i, 0)),
                pl.BlockSpec((1, features), lambda i: (0, 0)),  # gamma: stays resident
                pl.BlockSpec((1, features), lambda i: (0, 0)),  # beta:  stays resident
            ],
            out_specs=pl.BlockSpec((tile, features), lambda i: (i, 0)),
        ),
        compiler_params=pltpu.CompilerParams(
            dimension_semantics=("parallel",),   # lets v7x split the grid over 2 TCs
            vmem_limit_bytes=vmem_limit,
        ),
    )(x2, a2_2d, b2_2d)

    if padded_rows != rows:
        out = out[:rows]
    return out.reshape(orig_shape)


if __name__ == "__main__":
    key = jax.random.PRNGKey(0)
    batch, seq, hidden = 2, 8, 32

    x = jax.random.normal(key, (batch, seq, hidden), dtype=jnp.float32)
    # Deterministic parameter init matching nn.Parameter(torch.ones/zeros(features))
    a2 = jnp.ones((hidden,), dtype=jnp.float32)
    b2 = jnp.zeros((hidden,), dtype=jnp.float32)

    y = layer_norm(x, a2, b2, epsilon=1e-6)
    jax.block_until_ready(y)

    # Reference check in plain JAX (same unbiased-std, eps-on-std semantics as
    # the torch module).  Tolerance loosened slightly for the EUP approximate
    # reciprocal.
    mean = jnp.mean(x, axis=-1, keepdims=True)
    std = jnp.sqrt(jnp.sum((x - mean) ** 2, axis=-1, keepdims=True) / (hidden - 1))
    ref = a2 * (x - mean) / (std + 1e-6) + b2
    assert jnp.max(jnp.abs(y - ref)) < 1e-2

    print("KERNEL_OK")
</pallas_src>

<mosaic_0001>
module attributes {stable_mosaic.version = 11 : i64} {
  func.func @layernorm_kernel(%arg0: i32, %arg1: memref<16x32xf32, #tpu.memory_space<vmem>>, %arg2: memref<1x32xf32, #tpu.memory_space<vmem>>, %arg3: memref<1x32xf32, #tpu.memory_space<vmem>>, %arg4: memref<16x32xf32, #tpu.memory_space<vmem>>) attributes {dimension_semantics = [#tpu.dimension_semantics<parallel>], iteration_bounds = array<i64: 1>, scalar_prefetch = 0 : i64, scratch_operands = 0 : i64, tpu.core_type = #tpu.core_type<tc>, window_params = [{transform_indices = @transform_0, window_bounds = array<i64: 16, 32>}, {pipeline_mode = #tpu.pipeline_mode<synchronous>, transform_indices = @transform_1, window_bounds = array<i64: 1, 32>}, {pipeline_mode = #tpu.pipeline_mode<synchronous>, transform_indices = @transform_2, window_bounds = array<i64: 1, 32>}, {transform_indices = @transform_3, window_bounds = array<i64: 16, 32>}]} {
    %c0 = arith.constant 0 : index
    %c0_0 = arith.constant 0 : index
    %0 = vector.load %arg1[%c0, %c0_0] : memref<16x32xf32, #tpu.memory_space<vmem>>, vector<16x32xf32>
    %cst = arith.constant dense<0.000000e+00> : vector<16xf32>
    %1 = vector.multi_reduction <add>, %0, %cst [1] : vector<16x32xf32> to vector<16xf32>
    %2 = vector.shape_cast %1 : vector<16xf32> to vector<16x1xf32>
    %cst_1 = arith.constant 3.200000e+01 : f32
    %3 = vector.broadcast %cst_1 : f32 to vector<16x1xf32>
    %4 = arith.divf %2, %3 : vector<16x1xf32>
    %5 = vector.broadcast %4 : vector<16x1xf32> to vector<16x32xf32>
    %6 = arith.subf %0, %5 : vector<16x32xf32>
    %7 = arith.mulf %6, %6 : vector<16x32xf32>
    %cst_2 = arith.constant dense<0.000000e+00> : vector<16xf32>
    %8 = vector.multi_reduction <add>, %7, %cst_2 [1] : vector<16x32xf32> to vector<16xf32>
    %9 = vector.shape_cast %8 : vector<16xf32> to vector<16x1xf32>
    %cst_3 = arith.constant 0.0322580636 : f32
    %10 = vector.broadcast %cst_3 : f32 to vector<16x1xf32>
    %11 = arith.mulf %9, %10 : vector<16x1xf32>
    %12 = math.sqrt %11 : vector<16x1xf32>
    %cst_4 = arith.constant 9.99999997E-7 : f32
    %13 = vector.broadcast %cst_4 : f32 to vector<16x1xf32>
    %14 = arith.addf %12, %13 : vector<16x1xf32>
    %15 = tpu.reciprocal %14 {approx = true} : vector<16x1xf32> -> vector<16x1xf32>
    %c0_5 = arith.constant 0 : index
    %c0_6 = arith.constant 0 : index
    %16 = vector.load %arg2[%c0_5, %c0_6] : memref<1x32xf32, #tpu.memory_space<vmem>>, vector<1x32xf32>
    %c0_7 = arith.constant 0 : index
    %c0_8 = arith.constant 0 : index
    %17 = vector.load %arg3[%c0_7, %c0_8] : memref<1x32xf32, #tpu.memory_space<vmem>>, vector<1x32xf32>
    %18 = vector.broadcast %16 : vector<1x32xf32> to vector<16x32xf32>
    %19 = vector.broadcast %15 : vector<16x1xf32> to vector<16x32xf32>
    %20 = arith.mulf %18, %19 : vector<16x32xf32>
    %21 = arith.mulf %6, %20 : vector<16x32xf32>
    %22 = vector.broadcast %17 : vector<1x32xf32> to vector<16x32xf32>
    %23 = arith.addf %21, %22 : vector<16x32xf32>
    %c0_9 = arith.constant 0 : index
    %c0_10 = arith.constant 0 : index
    %24 = vector.load %arg4[%c0_9, %c0_10] : memref<16x32xf32, #tpu.memory_space<vmem>>, vector<16x32xf32>
    tpu.vector_store %arg4[%c0_9, %c0_10], %23 {strides = array<i32>} : memref<16x32xf32, #tpu.memory_space<vmem>>, vector<16x32xf32>,
    return
  }
  func.func @transform_0(%arg0: i32) -> (i32, i32) {
    %c0_i32 = arith.constant 0 : i32
    %c0_i32_0 = arith.constant 0 : i32
    return %arg0, %c0_i32 : i32, i32
  }
  func.func @transform_1(%arg0: i32) -> (i32, i32) {
    %c0_i32 = arith.constant 0 : i32
    %c0_i32_0 = arith.constant 0 : i32
    %c0_i32_1 = arith.constant 0 : i32
    return %c0_i32, %c0_i32_0 : i32, i32
  }
  func.func @transform_2(%arg0: i32) -> (i32, i32) {
    %c0_i32 = arith.constant 0 : i32
    %c0_i32_0 = arith.constant 0 : i32
    %c0_i32_1 = arith.constant 0 : i32
    return %c0_i32, %c0_i32_0 : i32, i32
  }
  func.func @transform_3(%arg0: i32) -> (i32, i32) {
    %c0_i32 = arith.constant 0 : i32
    %c0_i32_0 = arith.constant 0 : i32
    return %arg0, %c0_i32 : i32, i32
  }
}

</mosaic_0001>

<bundles_post_ra>
// kernel: tpu_custom_call.1
= control target key start
LH: loop header
LB: loop body
LE: loop exit
PB: predicated region body
PF: predicated region fallthrough
CT: control target
= control target key end

     0   :  { %8 = vsyncpa [#allocation3], 0  ;;  %s285_s0 = inlined_call_operand.hbm [shape: f32[16,32], index: 0, kind: input, shape index: {}]   ;;  %s286_s1 = inlined_call_operand.hbm [shape: f32[1,32], index: 1, kind: input, shape index: {}]   ;;  %s287_s2 = inlined_call_operand.vmem [shape: f32[1,32], index: 2, kind: input, shape index: {}]   ;;  %s288_s3 = inlined_call_operand.hbm [shape: f32[16,32], index: 3, kind: output, shape index: {}]  }
   0x1   :  { %9 = vsyncpa [#allocation6], 0 }
   0x2   :  { %10 = vsyncpa [#allocation4], 0  ;;  %s15_s14 = sshll.u32 %s285_s0, 4  ;;  %s235_s15 = smov [#allocation2]   ;;  %s16_s14 = int_to_ptr.hbm [resolvable:$true] %s15_s14 }
   0x3   :  { %s17_s16 = sshll.u32 %s235_s15, 4  ;;  %s29_s19 = sshll.u32 %s286_s1, 4  ;;  %s18_s16 = int_to_ptr.vmem [resolvable:$true] %s17_s16  ;;  %s30_s19 = int_to_ptr.hbm [resolvable:$true] %s29_s19 }
   0x4   :  { %s236_s20 = smov 128   ;;  %s237_s21 = smov 8  }
   0x5   :  { %23 = dma.hbm_to_vmem [thread:$0]  %s16_s14, 256, %s18_s16, [#allocation3], %s236_s20, %s236_s20, %s237_s21  }
   0x6   :  { %s238_s22 = smov [#allocation5]  }
   0x7   :  { %s31_s23 = sshll.u32 %s238_s22, 4  ;;  %s32_s23 = int_to_ptr.vmem [resolvable:$true] %s31_s23 }
   0x8   :  { %34 = dma.hbm_to_vmem [thread:$0]  %s30_s19, 16, %s32_s23, [#allocation6]  }
   0x9   :  { %229 = dma.done.wait [#allocation3], 256  }
   0xa   :  { %230 = vsyncadd [#allocation3], 4294967040 }
   0xb   :  { %231 = dma.done.wait [#allocation6], 16  }
   0xc   :  { %232 = vsyncadd [#allocation6], 4294967280  ;;  %vm47_vm0 = vcmask 261120   ;;  %v45_v0 = vld [vmem:[#allocation2] sm:$0xff]  ;;  %v46_v2 = vld [vmem:[#allocation2 + $0x8] sm:$0xff]  ;;  %v239_v4 = vmov 32.0  }
   0xd   :  { %v48_v1 = vsel %vm47_vm0, %v45_v0, 0.0  ;;  %v51_v3 = vsel %vm47_vm0, %v46_v2, 0.0  ;;  %147 = vrcp.f32 %v239_v4  ;;  %v145_v44 = vld [vmem:[#allocation5] ss:$0 sm:$0xff]  ;;  %v146_v50 = vld [vmem:[%s287_s2] ss:$0 sm:$0xff] }
   0xe   :  { %49 = vadd.xlane.f32.xlu0 %v48_v1  ;;  %s240_s24 = smov [#allocation7]   ;;  %s125_s28 = sshll.u32 %s288_s3, 4  ;;  %s126_s28 = int_to_ptr.hbm [resolvable:$true] %s125_s28 }
   0xf   :  { %s123_s25 = sshll.u32 %s240_s24, 4  ;;  %s124_s25 = int_to_ptr.vmem [resolvable:$true] %s123_s25 }
  0x13   :  { %v148_v5 = vpop.eup %147 }
  0x14   :  { %v55_v6 = vmul.f32 32.0, %v148_v5  ;;  %vm59_vm1 = vweird.f32 %v148_v5 }
  0x16   :  { %52 = vadd.xlane.f32.xlu0 %v51_v3  ;;  %v56_v7 = vsub.f32 1.0, %v55_v6 }
  0x18   :  { %v57_v8 = vmul.f32 %v148_v5, %v56_v7 }
  0x1a   :  { %v58_v9 = vadd.f32 %v148_v5, %v57_v8 }
  0x1c   :  { %v60_v10 = vsel %vm59_vm1, %v148_v5, %v58_v9 }
  0x81   :  { %v50_v11 = vpop.xlane.xlu0 %49 }
  0x82   :  { %v61_v12 = vmul.f32 %v60_v10, %v50_v11 }
  0x84   :  { %v63_v13 = vsub.f32 %v45_v0, %v61_v12 }
  0x86   :  { %v65_v14 = vmul.f32 %v63_v13, %v63_v13 }
  0x88   :  { %v67_v15 = vsel %vm47_vm0, %v65_v14, 0.0 }
  0x89   :  { %68 = vadd.xlane.f32.xlu1 %v67_v15  ;;  %v53_v16 = vpop.xlane.xlu0 %52 }
  0x8a   :  { %v62_v17 = vmul.f32 %v60_v10, %v53_v16 }
  0x8c   :  { %v64_v18 = vsub.f32 %v46_v2, %v62_v17 }
  0x8e   :  { %v66_v19 = vmul.f32 %v64_v18, %v64_v18 }
  0x90   :  { %v70_v20 = vsel %vm47_vm0, %v66_v19, 0.0 }
  0x91   :  { %71 = vadd.xlane.f32.xlu1 %v70_v20 }
  0xfc   :  { %v69_v21 = vpop.xlane.xlu1 %68 }
  0xfd   :  { %v73_v22 = vmul.f32 0.032258064, %v69_v21 }
  0xff   :  { %149 = vrsqrt.f32 %v73_v22  ;;  %vm82_vm2 = vcmp.eq.f32.partialorder %v73_v22, inf  ;;  %v85_v35 = vand.u32 2147483648, %v73_v22  ;;  %vm84_vm3 = vcmp.eq.f32.partialorder %v73_v22, 0.0 }
 0x104   :  { %v72_v23 = vpop.xlane.xlu1 %71 }
 0x105   :  { %v150_v24 = vpop.eup %149  ;;  %v74_v25 = vmul.f32 0.032258064, %v72_v23 }
 0x106   :  { %v76_v26 = vmul.f32 %v150_v24, %v73_v22 }
 0x107   :  { %151 = vrsqrt.f32 %v74_v25  ;;  %vm94_vm4 = vcmp.eq.f32.partialorder %v74_v25, inf  ;;  %v97_v43 = vand.u32 2147483648, %v74_v25  ;;  %vm96_vm5 = vcmp.eq.f32.partialorder %v74_v25, 0.0 }
 0x108   :  { %v77_v27 = vmul.f32 %v150_v24, %v76_v26 }
 0x10a   :  { %v78_v28 = vmul.f32 0.5, %v77_v27 }
 0x10c   :  { %v79_v29 = vsub.f32 1.5, %v78_v28 }
 0x10d   :  { %v152_v30 = vpop.eup %151 }
 0x10e   :  { %v80_v31 = vmul.f32 %v150_v24, %v79_v29  ;;  %v88_v32 = vmul.f32 %v152_v30, %v74_v25 }
 0x110   :  { %v81_v33 = vmul.f32 %v80_v31, %v73_v22  ;;  %v89_v34 = vmul.f32 %v152_v30, %v88_v32 }
 0x112   :  { %v90_v36 = vmul.f32 0.5, %v89_v34  ;;  %v83_v37 = vsel %vm82_vm2, %v73_v22, %v81_v33 }
 0x113   :  { %v86_v38 = vsel %vm84_vm3, %v85_v35, %v83_v37 }
 0x114   :  { %v91_v39 = vsub.f32 1.5, %v90_v36  ;;  %v99_v40 = vadd.f32 1e-06, %v86_v38 }
 0x116   :  { %v92_v41 = vmul.f32 %v152_v30, %v91_v39  ;;  %153 = vrcp.f32 %v99_v40 }
 0x118   :  { %v93_v42 = vmul.f32 %v92_v41, %v74_v25 }
 0x11a   :  { %v95_v45 = vsel %vm94_vm4, %v74_v25, %v93_v42 }
 0x11b   :  { %v98_v46 = vsel %vm96_vm5, %v97_v43, %v95_v45 }
 0x11c   :  { %v154_v47 = vpop.eup %153  ;;  %v100_v48 = vadd.f32 1e-06, %v98_v46 }
 0x11d   :  { %v108_v49 = vmul.f32 %v154_v47, %v145_v44 }
 0x11e   :  { %155 = vrcp.f32 %v100_v48 }
 0x11f   :  { %v110_v51 = vmul.f32 %v108_v49, %v63_v13 }
 0x121   :  { %v115_v52 = vadd.f32 %v146_v50, %v110_v51 }
 0x123   :  { %117 = vst.msk [vmem:[#allocation7] sm:$0xff] %vm47_vm0, %v115_v52 }
 0x124   :  { %v156_v53 = vpop.eup %155 }
 0x125   :  { %v109_v54 = vmul.f32 %v156_v53, %v145_v44 }
 0x127   :  { %v111_v55 = vmul.f32 %v109_v54, %v64_v18 }
 0x129   :  { %v116_v56 = vadd.f32 %v146_v50, %v111_v55 }
 0x12b   :  { %118 = vst.msk [vmem:[#allocation7 + $0x8] sm:$0xff] %vm47_vm0, %v116_v56 }
 0x12c   :  { %131 = dma.vmem_to_hbm [thread:$0]  %s124_s25, 256, %s126_s28, [#allocation4], %s236_s20, %s236_s20, %s237_s21  }
 0x12d   :  { %233 = dma.done.wait [#allocation4], 256  }
 0x12e   :  { %234 = vsyncadd [#allocation4], 4294967040 }
 0x12f   :  { %136 = vsyncpa [#allocation3], 1 }
 0x130   :  { %137 = vsyncpa [#allocation6], 1 }
 0x131   :  { %138 = vsyncpa [#allocation4], 1 }

</bundles_post_ra>
